<compile_context>
chip_gen: v7x
topology: tpu7x:2x2x1
jax: 0.10.0
libtpu: 0.0.40
codegen_flags: <defaults>
</compile_context>

<pallas_src>
import functools

import jax
import jax.numpy as jnp
import numpy as np
from jax.experimental import pallas as pl
from jax.experimental.pallas import tpu as pltpu


def _round_up(x, m):
    return ((x + m - 1) // m) * m


def _cdiv(a, b):
    return -(-a // b)


def _default_compute_dtype():
    """bf16 recursion on chips with packed-bf16 VALUs (v6e/v7x), else f32."""
    try:
        kind = jax.devices()[0].device_kind.lower()
    except Exception:
        return jnp.float32
    if any(tag in kind for tag in ("v6", "v7", "7x")):
        return jnp.bfloat16
    return jnp.float32


def _vmem_limit_bytes():
    """~0.75x the reported per-core VMEM, capped at 100 MiB (fallback 64 MiB)."""
    try:
        cap = int(pltpu.get_tpu_info().vmem_capacity_bytes)
    except Exception:
        cap = 0
    if cap <= 0:
        return 64 * 1024 * 1024
    return int(min(0.75 * cap, 100 * 1024 * 1024))


# ----------------------------- Pallas kernel ------------------------------- #

def _kan_kernel(const_ref, x_ref, w_ref, o_ref, *, spline_order, n_knots,
                in_pad, compute_dtype):
    """One batch tile of the KAN layer (everything lane-flattened).

    const_ref : (1, TOTAL) f32  packed [grid | 1/denL(k=1..S) | -1/denR(k=1..S)],
                each sub-block lane-flattened as knot_index*IN_pad + feature.
    x_ref     : (TB, IN_pad) f32
    w_ref     : ((GK+1)*IN_pad, OUT_pad)  packed [base W^T ; scaled spline W]
    o_ref     : (TB, OUT_pad) f32
    """
    P = n_knots
    x = x_ref[...]                                        # (TB, IN_pad) f32
    g_flat = const_ref[:, : P * in_pad]                   # (1, P*IN_pad) f32

    # d[b, j*IN_pad + i] = x[b, i] - grid[i, j]; computed once, reused by every
    # recursion step.  All later slices start at multiples of IN_pad (>=128),
    # so they are lane-tile aligned (no relayout).
    d = jnp.concatenate([x] * P, axis=1) - g_flat          # (TB, P*IN_pad) f32

    # Degree-0 bases: indicator of the knot interval (knot index on lanes).
    bases = jnp.logical_and(d[:, : (P - 1) * in_pad] >= 0.0,
                            d[:, in_pad:] < 0.0).astype(compute_dtype)

    d_c = d.astype(compute_dtype)
    off = P * in_pad
    for k in range(1, spline_order + 1):
        w = (P - 1 - k) * in_pad
        rl = const_ref[:, off: off + w].astype(compute_dtype)        # 1/(g[j+k]-g[j])
        rr_neg = const_ref[:, off + w: off + 2 * w].astype(compute_dtype)  # -1/(g[j+k+1]-g[j+1])
        off += 2 * w
        left = d_c[:, :w] * rl                                       # (x-g[j]) / (...)
        right = d_c[:, (k + 1) * in_pad:] * rr_neg                   # (g[j+k+1]-x) / (...)
        bases = left * bases[:, :w] + right * bases[:, in_pad:]
    # bases: (TB, GK*IN_pad) in compute_dtype, flat index = basis*IN_pad + feat.

    mxu_dtype = w_ref.dtype
    silu_x = x * jax.nn.sigmoid(x)                         # sigmoid -> EUP slot
    feats = jnp.concatenate(
        [silu_x.astype(mxu_dtype), bases.astype(mxu_dtype)], axis=1)
    # Single fused MXU contraction (base + spline), f32 accumulation.
    o_ref[...] = jnp.dot(feats, w_ref[...],
                         preferred_element_type=jnp.float32).astype(o_ref.dtype)


# ------------------------------ Wrapper ------------------------------------ #

def kan_layer_forward(x, knot_grid, base_weight, spline_weight, spline_scaler,
                      *, spline_order=3, tile_b=256, use_bf16_matmul=True,
                      compute_dtype=None, single_buffer_weights=None):
    """JAX wrapper reproducing KANLayer_efficient.forward.

    x             : (..., IN)
    knot_grid     : (IN, P)         P = grid_size + 2*spline_order + 1
    base_weight   : (OUT, IN)
    spline_weight : (OUT, IN, GK)   GK = grid_size + spline_order
    spline_scaler : (OUT, IN)       (enable_standalone_scale_spline=True)
    returns       : (..., OUT), float32
    """
    in_features = x.shape[-1]
    out_features = base_weight.shape[0]
    gk = spline_weight.shape[-1]
    P = knot_grid.shape[-1]

    if compute_dtype is None:
        compute_dtype = _default_compute_dtype()
    w_dtype = jnp.bfloat16 if use_bf16_matmul else jnp.float32

    in_pad = _round_up(in_features, 128)
    out_pad = _round_up(out_features, 128)

    original_shape = x.shape
    xf = x.reshape(-1, in_features).astype(jnp.float32)
    B = xf.shape[0]

    # ---- constants: knot grid + Cox-de Boor reciprocals, one packed array ----
    g = knot_grid.astype(jnp.float32)                       # (IN, P)
    if in_pad > in_features:
        # Padded feature columns replicate the last real row: keeps the
        # precomputed reciprocals finite (their weights are zero anyway, so
        # padded lanes contribute exactly 0 and never produce NaN).
        g = jnp.concatenate(
            [g, jnp.broadcast_to(g[-1:], (in_pad - in_features, P))], axis=0)
    g_t = g.T                                               # (P, IN_pad)
    pieces = [g_t.reshape(1, -1)]                           # lane idx j*IN_pad+i
    for k in range(1, spline_order + 1):
        rl = 1.0 / (g_t[k:-1, :] - g_t[:-(k + 1), :])       # (P-1-k, IN_pad)
        rr_neg = -1.0 / (g_t[k + 1:, :] - g_t[1:-k, :])     # sign folded in
        pieces.append(rl.reshape(1, -1))
        pieces.append(rr_neg.reshape(1, -1))
    consts = jnp.concatenate(pieces, axis=1)                # (1, TOTAL) f32
    total = consts.shape[1]

    # ---- packed weight: [base W^T ; scaled spline W] -> ((GK+1)*IN_pad, OUT) -
    wb = jnp.zeros((1, in_pad, out_pad), jnp.float32)
    wb = wb.at[0, :in_features, :out_features].set(
        base_weight.astype(jnp.float32).T)
    scaled = (spline_weight * spline_scaler[:, :, None]).astype(jnp.float32)
    ws3 = jnp.zeros((gk, in_pad, out_pad), jnp.float32)
    ws3 = ws3.at[:, :in_features, :out_features].set(
        jnp.transpose(scaled, (2, 1, 0)))
    w_all = jnp.concatenate([wb, ws3], axis=0).reshape(
        (gk + 1) * in_pad, out_pad).astype(w_dtype)

    # ---- VMEM budget: generation-aware limit, resident-aware batch tile -----
    vmem_limit = _vmem_limit_bytes()
    w_bytes = jnp.dtype(w_dtype).itemsize
    c_bytes = jnp.dtype(compute_dtype).itemsize
    resident = w_all.size * w_bytes + total * 4
    if single_buffer_weights is None:
        # Auto: single-buffer the block-constant weights/constants when
        # double-buffering them would eat more than half the VMEM budget
        # (the v7x large-weight case).
        single_buffer_weights = 2 * resident > vmem_limit // 2
    per_row = (2 * 4 * (in_pad + out_pad)            # x / out, double-buffered
               + 2 * 4 * P * in_pad                  # tiled x + d (f32)
               + 3 * c_bytes * P * in_pad            # bases + left/right temps
               + w_bytes * (gk + 1) * in_pad         # feats
               + 4 * out_pad)                        # f32 accumulator
    budget = (vmem_limit - (1 if single_buffer_weights else 2) * resident
              - 4 * 1024 * 1024)
    tb_cap = max(8, (budget // max(per_row, 1)) // 8 * 8)

    tb = max(8, min(_round_up(tile_b, 8), tb_cap))
    if B > 8:
        # >= 2 grid steps so both TensorCores of a v7x chip get work.
        tb = max(8, min(tb, _round_up(_cdiv(B, 2), 8)))
    Bp = _round_up(B, tb)
    xf = jnp.pad(xf, ((0, Bp - B), (0, in_pad - in_features)))
    grid_steps = Bp // tb

    def _resident_spec(shape):
        idx = lambda i: tuple(0 for _ in shape)
        if single_buffer_weights:
            try:
                return pl.BlockSpec(shape, idx, pipeline_mode=pl.Buffered(1))
            except Exception:
                pass   # older jax: fall back to default double-buffering
        return pl.BlockSpec(shape, idx)

    in_specs = [
        _resident_spec((1, total)),                           # packed constants
        pl.BlockSpec((tb, in_pad), lambda i: (i, 0)),         # x tile
        _resident_spec(((gk + 1) * in_pad, out_pad)),         # packed weight
    ]

    cost = pl.CostEstimate(
        flops=2 * Bp * (gk + 1) * in_pad * out_pad,
        transcendentals=Bp * in_pad,
        bytes_accessed=(4 * Bp * (in_pad + out_pad)
                        + w_bytes * int(w_all.size) + 4 * total),
    )

    out = pl.pallas_call(
        functools.partial(_kan_kernel, spline_order=spline_order, n_knots=P,
                          in_pad=in_pad, compute_dtype=compute_dtype),
        out_shape=jax.ShapeDtypeStruct((Bp, out_pad), jnp.float32),
        grid_spec=pltpu.PrefetchScalarGridSpec(
            num_scalar_prefetch=0,
            grid=(grid_steps,),
            in_specs=in_specs,
            out_specs=pl.BlockSpec((tb, out_pad), lambda i: (i, 0)),
        ),
        compiler_params=pltpu.CompilerParams(
            dimension_semantics=("parallel",),
            vmem_limit_bytes=vmem_limit),
        cost_estimate=cost,
    )(consts, xf, w_all)

    out = out[:B, :out_features]
    return out.reshape(*original_shape[:-1], out_features)


# --------------------------- Pure-JAX reference ----------------------------- #

def _ref_b_splines(x, knot_grid, spline_order):
    x3 = x[:, :, None]
    g = knot_grid[None, :, :]
    bases = jnp.logical_and(x3 >= g[:, :, :-1], x3 < g[:, :, 1:]).astype(x.dtype)
    for k in range(1, spline_order + 1):
        left = (x3 - g[:, :, : -(k + 1)]) / (g[:, :, k:-1] - g[:, :, : -(k + 1)])
        right = (g[:, :, k + 1:] - x3) / (g[:, :, k + 1:] - g[:, :, 1:-k])
        bases = left * bases[:, :, :-1] + right * bases[:, :, 1:]
    return bases


def ref_forward(x, knot_grid, base_weight, spline_weight, spline_scaler,
                *, spline_order=3):
    original_shape = x.shape
    xf = x.reshape(-1, x.shape[-1]).astype(jnp.float32)
    base_out = jax.nn.silu(xf) @ base_weight.T
    bsp = _ref_b_splines(xf, knot_grid, spline_order)                   # (B, IN, GK)
    scaled = spline_weight * spline_scaler[:, :, None]                  # (OUT, IN, GK)
    spline_out = bsp.reshape(xf.shape[0], -1) @ scaled.reshape(scaled.shape[0], -1).T
    out = base_out + spline_out
    return out.reshape(*original_shape[:-1], base_weight.shape[0])


# ------------------------------- Main --------------------------------------- #

if __name__ == "__main__":
    in_features = 8
    out_features = 16
    grid_size = 5
    spline_order = 3
    grid_range = (-1.0, 1.0)

    # Knot grid exactly as in __init__:
    h = (grid_range[1] - grid_range[0]) / grid_size
    knots = (jnp.arange(-spline_order, grid_size + spline_order + 1,
                        dtype=jnp.float32) * h + grid_range[0])
    knot_grid = jnp.broadcast_to(knots, (in_features, knots.shape[0]))   # (IN, P)

    # TODO(synk): PyTorch's reset_parameters uses kaiming_uniform + an
    # lstsq-based curve2coeff init; deterministic random parameters of the same
    # shapes are used here instead (forward semantics are unchanged).
    key = jax.random.PRNGKey(0)
    k_x, k_bw, k_sw, k_ss, k_x2 = jax.random.split(key, 5)
    base_weight = 0.5 * jax.random.normal(k_bw, (out_features, in_features),
                                          jnp.float32)
    spline_weight = 0.1 * jax.random.normal(
        k_sw, (out_features, in_features, grid_size + spline_order), jnp.float32)
    spline_scaler = 0.5 * jax.random.normal(k_ss, (out_features, in_features),
                                            jnp.float32)

    # Small input: (batch=2, seq=8, in_features=8) -> flattened B=16 rows.
    x = jax.random.uniform(k_x, (2, 8, in_features), jnp.float32,
                           minval=-1.0, maxval=1.0)
    ref = ref_forward(x, knot_grid, base_weight, spline_weight, spline_scaler,
                      spline_order=spline_order)

    # 1) Full-f32 path (tight tolerance vs the pure-JAX reference).
    out_f32 = kan_layer_forward(x, knot_grid, base_weight, spline_weight,
                                spline_scaler, spline_order=spline_order,
                                tile_b=256, use_bf16_matmul=False,
                                compute_dtype=jnp.float32)
    out_f32 = jax.block_until_ready(out_f32)
    assert out_f32.shape == (2, 8, out_features), out_f32.shape
    np.testing.assert_allclose(np.asarray(out_f32), np.asarray(ref),
                               rtol=5e-5, atol=5e-5)

    # 2) Default fast path: bf16 MXU weights + chip-auto recursion dtype
    #    (bf16 on v6e/v7x, f32 on v5e).  Looser tolerance: bf16 quantization of
    #    spline_weight*spline_scaler dominates the error.
    out_fast = kan_layer_forward(x, knot_grid, base_weight, spline_weight,
                                 spline_scaler, spline_order=spline_order,
                                 tile_b=256)
    out_fast = jax.block_until_ready(out_fast)
    np.testing.assert_allclose(np.asarray(out_fast), np.asarray(ref),
                               rtol=5e-2, atol=5e-2)

    # 3) Multiple batch-grid steps (exercise tiling): B=64 rows, tile of 16.
    x2 = jax.random.uniform(k_x2, (4, 16, in_features), jnp.float32,
                            minval=-1.0, maxval=1.0)
    out2 = kan_layer_forward(x2, knot_grid, base_weight, spline_weight,
                             spline_scaler, spline_order=spline_order,
                             tile_b=16, use_bf16_matmul=False,
                             compute_dtype=jnp.float32)
    out2 = jax.block_until_ready(out2)
    ref2 = ref_forward(x2, knot_grid, base_weight, spline_weight, spline_scaler,
                       spline_order=spline_order)
    np.testing.assert_allclose(np.asarray(out2), np.asarray(ref2),
                               rtol=5e-5, atol=5e-5)

    print("KERNEL_OK")
</pallas_src>

<mosaic_0001>
module attributes {stable_mosaic.version = 11 : i64} {
  func.func @_kan_kernel(%arg0: i32, %arg1: memref<1x8448xf32, #tpu.memory_space<vmem>>, %arg2: memref<8x128xf32, #tpu.memory_space<vmem>>, %arg3: memref<1152x128xf32, #tpu.memory_space<vmem>>, %arg4: memref<8x128xf32, #tpu.memory_space<vmem>>) attributes {dimension_semantics = [#tpu.dimension_semantics<parallel>], iteration_bounds = array<i64: 2>, scalar_prefetch = 0 : i64, scratch_operands = 0 : i64, tpu.core_type = #tpu.core_type<tc>, window_params = [{pipeline_mode = #tpu.pipeline_mode<synchronous>, transform_indices = @transform_0, window_bounds = array<i64: 1, 8448>}, {transform_indices = @transform_1, window_bounds = array<i64: 8, 128>}, {pipeline_mode = #tpu.pipeline_mode<synchronous>, transform_indices = @transform_2, window_bounds = array<i64: 1152, 128>}, {transform_indices = @transform_3, window_bounds = array<i64: 8, 128>}]} {
    %c0 = arith.constant 0 : index
    %c0_0 = arith.constant 0 : index
    %0 = vector.load %arg2[%c0, %c0_0] : memref<8x128xf32, #tpu.memory_space<vmem>>, vector<8x128xf32>
    %c0_1 = arith.constant 0 : index
    %c0_2 = arith.constant 0 : index
    %1 = vector.load %arg1[%c0_1, %c0_2] : memref<1x8448xf32, #tpu.memory_space<vmem>>, vector<1x1536xf32>
    %2 = tpu.concatenate %0, %0, %0, %0, %0, %0, %0, %0, %0, %0, %0, %0 in 1 : vector<8x128xf32>, vector<8x128xf32>, vector<8x128xf32>, vector<8x128xf32>, vector<8x128xf32>, vector<8x128xf32>, vector<8x128xf32>, vector<8x128xf32>, vector<8x128xf32>, vector<8x128xf32>, vector<8x128xf32>, vector<8x128xf32> -> vector<8x1536xf32>
    %3 = vector.broadcast %1 : vector<1x1536xf32> to vector<8x1536xf32>
    %4 = arith.subf %2, %3 : vector<8x1536xf32>
    %5 = vector.extract_strided_slice %4 {offsets = [0, 0], sizes = [8, 1408], strides = [1, 1]} : vector<8x1536xf32> to vector<8x1408xf32>
    %cst = arith.constant 0.000000e+00 : f32
    %6 = vector.broadcast %cst : f32 to vector<8x1408xf32>
    %7 = arith.cmpf oge, %5, %6 : vector<8x1408xf32>
    %8 = vector.extract_strided_slice %4 {offsets = [0, 128], sizes = [8, 1408], strides = [1, 1]} : vector<8x1536xf32> to vector<8x1408xf32>
    %cst_3 = arith.constant 0.000000e+00 : f32
    %9 = vector.broadcast %cst_3 : f32 to vector<8x1408xf32>
    %10 = arith.cmpf olt, %8, %9 : vector<8x1408xf32>
    %11 = arith.andi %7, %10 : vector<8x1408xi1>
    %12 = arith.extui %11 : vector<8x1408xi1> to vector<8x1408xi32>
    %13 = arith.sitofp %12 : vector<8x1408xi32> to vector<8x1408xf32>
    %c0_4 = arith.constant 0 : index
    %c1536 = arith.constant 1536 : index
    %14 = vector.load %arg1[%c0_4, %c1536] : memref<1x8448xf32, #tpu.memory_space<vmem>>, vector<1x1280xf32>
    %c0_5 = arith.constant 0 : index
    %c2816 = arith.constant 2816 : index
    %15 = vector.load %arg1[%c0_5, %c2816] : memref<1x8448xf32, #tpu.memory_space<vmem>>, vector<1x1280xf32>
    %16 = vector.extract_strided_slice %4 {offsets = [0, 0], sizes = [8, 1280], strides = [1, 1]} : vector<8x1536xf32> to vector<8x1280xf32>
    %17 = vector.broadcast %14 : vector<1x1280xf32> to vector<8x1280xf32>
    %18 = arith.mulf %16, %17 : vector<8x1280xf32>
    %19 = vector.extract_strided_slice %4 {offsets = [0, 256], sizes = [8, 1280], strides = [1, 1]} : vector<8x1536xf32> to vector<8x1280xf32>
    %20 = vector.broadcast %15 : vector<1x1280xf32> to vector<8x1280xf32>
    %21 = arith.mulf %19, %20 : vector<8x1280xf32>
    %22 = vector.extract_strided_slice %13 {offsets = [0, 0], sizes = [8, 1280], strides = [1, 1]} : vector<8x1408xf32> to vector<8x1280xf32>
    %23 = arith.mulf %18, %22 : vector<8x1280xf32>
    %24 = vector.extract_strided_slice %13 {offsets = [0, 128], sizes = [8, 1280], strides = [1, 1]} : vector<8x1408xf32> to vector<8x1280xf32>
    %25 = arith.mulf %21, %24 : vector<8x1280xf32>
    %26 = arith.addf %23, %25 : vector<8x1280xf32>
    %c0_6 = arith.constant 0 : index
    %c4096 = arith.constant 4096 : index
    %27 = vector.load %arg1[%c0_6, %c4096] : memref<1x8448xf32, #tpu.memory_space<vmem>>, vector<1x1152xf32>
    %c0_7 = arith.constant 0 : index
    %c5248 = arith.constant 5248 : index
    %28 = vector.load %arg1[%c0_7, %c5248] : memref<1x8448xf32, #tpu.memory_space<vmem>>, vector<1x1152xf32>
    %29 = vector.extract_strided_slice %4 {offsets = [0, 0], sizes = [8, 1152], strides = [1, 1]} : vector<8x1536xf32> to vector<8x1152xf32>
    %30 = vector.broadcast %27 : vector<1x1152xf32> to vector<8x1152xf32>
    %31 = arith.mulf %29, %30 : vector<8x1152xf32>
    %32 = vector.extract_strided_slice %4 {offsets = [0, 384], sizes = [8, 1152], strides = [1, 1]} : vector<8x1536xf32> to vector<8x1152xf32>
    %33 = vector.broadcast %28 : vector<1x1152xf32> to vector<8x1152xf32>
    %34 = arith.mulf %32, %33 : vector<8x1152xf32>
    %35 = vector.extract_strided_slice %26 {offsets = [0, 0], sizes = [8, 1152], strides = [1, 1]} : vector<8x1280xf32> to vector<8x1152xf32>
    %36 = arith.mulf %31, %35 : vector<8x1152xf32>
    %37 = vector.extract_strided_slice %26 {offsets = [0, 128], sizes = [8, 1152], strides = [1, 1]} : vector<8x1280xf32> to vector<8x1152xf32>
    %38 = arith.mulf %34, %37 : vector<8x1152xf32>
    %39 = arith.addf %36, %38 : vector<8x1152xf32>
    %c0_8 = arith.constant 0 : index
    %c6400 = arith.constant 6400 : index
    %40 = vector.load %arg1[%c0_8, %c6400] : memref<1x8448xf32, #tpu.memory_space<vmem>>, vector<1x1024xf32>
    %c0_9 = arith.constant 0 : index
    %c7424 = arith.constant 7424 : index
    %41 = vector.load %arg1[%c0_9, %c7424] : memref<1x8448xf32, #tpu.memory_space<vmem>>, vector<1x1024xf32>
    %42 = vector.extract_strided_slice %4 {offsets = [0, 0], sizes = [8, 1024], strides = [1, 1]} : vector<8x1536xf32> to vector<8x1024xf32>
    %43 = vector.broadcast %40 : vector<1x1024xf32> to vector<8x1024xf32>
    %44 = arith.mulf %42, %43 : vector<8x1024xf32>
    %45 = vector.extract_strided_slice %4 {offsets = [0, 512], sizes = [8, 1024], strides = [1, 1]} : vector<8x1536xf32> to vector<8x1024xf32>
    %46 = vector.broadcast %41 : vector<1x1024xf32> to vector<8x1024xf32>
    %47 = arith.mulf %45, %46 : vector<8x1024xf32>
    %48 = vector.extract_strided_slice %39 {offsets = [0, 0], sizes = [8, 1024], strides = [1, 1]} : vector<8x1152xf32> to vector<8x1024xf32>
    %49 = arith.mulf %44, %48 : vector<8x1024xf32>
    %50 = vector.extract_strided_slice %39 {offsets = [0, 128], sizes = [8, 1024], strides = [1, 1]} : vector<8x1152xf32> to vector<8x1024xf32>
    %51 = arith.mulf %47, %50 : vector<8x1024xf32>
    %52 = arith.addf %49, %51 : vector<8x1024xf32>
    %53 = arith.negf %0 : vector<8x128xf32>
    %54 = math.exp %53 : vector<8x128xf32>
    %cst_10 = arith.constant 1.000000e+00 : f32
    %55 = vector.broadcast %cst_10 : f32 to vector<8x128xf32>
    %56 = arith.addf %55, %54 : vector<8x128xf32>
    %57 = arith.divf %55, %56 : vector<8x128xf32>
    %58 = arith.mulf %0, %57 : vector<8x128xf32>
    %59 = tpu.concatenate %58, %52 in 1 : vector<8x128xf32>, vector<8x1024xf32> -> vector<8x1152xf32>
    %c0_11 = arith.constant 0 : index
    %c0_12 = arith.constant 0 : index
    %60 = vector.load %arg3[%c0_11, %c0_12] : memref<1152x128xf32, #tpu.memory_space<vmem>>, vector<1152x128xf32>
    %cst_13 = arith.constant dense<0.000000e+00> : vector<8x128xf32>
    %61 = tpu.matmul %59, %60, %cst_13 {dimension_numbers = #tpu.dot_dimension_numbers<[1], [0], [0], [1], [0, 0, 1, 1], [], []>} : vector<8x1152xf32>, vector<1152x128xf32>, vector<8x128xf32> -> vector<8x128xf32>
    %c0_14 = arith.constant 0 : index
    %c0_15 = arith.constant 0 : index
    %62 = vector.load %arg4[%c0_14, %c0_15] : memref<8x128xf32, #tpu.memory_space<vmem>>, vector<8x128xf32>
    tpu.vector_store %arg4[%c0_14, %c0_15], %61 {strides = array<i32>} : memref<8x128xf32, #tpu.memory_space<vmem>>, vector<8x128xf32>,
    return
  }
  func.func @transform_0(%arg0: i32) -> (i32, i32) {
    %c0_i32 = arith.constant 0 : i32
    %c0_i32_0 = arith.constant 0 : i32
    %c0_i32_1 = arith.constant 0 : i32
    return %c0_i32, %c0_i32_0 : i32, i32
  }
  func.func @transform_1(%arg0: i32) -> (i32, i32) {
    %c0_i32 = arith.constant 0 : i32
    %c0_i32_0 = arith.constant 0 : i32
    return %arg0, %c0_i32 : i32, i32
  }
  func.func @transform_2(%arg0: i32) -> (i32, i32) {
    %c0_i32 = arith.constant 0 : i32
    %c0_i32_0 = arith.constant 0 : i32
    %c0_i32_1 = arith.constant 0 : i32
    return %c0_i32, %c0_i32_0 : i32, i32
  }
  func.func @transform_3(%arg0: i32) -> (i32, i32) {
    %c0_i32 = arith.constant 0 : i32
    %c0_i32_0 = arith.constant 0 : i32
    return %arg0, %c0_i32 : i32, i32
  }
}

</mosaic_0001>

<bundles_post_ra>
// kernel: tpu_custom_call.1
= control target key start
LH: loop header
LB: loop body
LE: loop exit
PB: predicated region body
PF: predicated region fallthrough
CT: control target
= control target key end

     0   :  { %8 = vsyncpa [#allocation3], 0  ;;  %s2745_s0 = inlined_call_operand.hbm [shape: f32[1,8448], index: 0, kind: input, shape index: {}]   ;;  %s2746_s1 = inlined_call_operand.hbm [shape: f32[16,128], index: 1, kind: input, shape index: {}]   ;;  %s2747_s2 = inlined_call_operand.hbm [shape: f32[1152,128], index: 2, kind: input, shape index: {}]   ;;  %s2748_s3 = inlined_call_operand.hbm [shape: f32[16,128], index: 3, kind: output, shape index: {}]  }
   0x1   :  { %9 = vsyncpa [#allocation6], 0 }
   0x2   :  { %11 = vsyncpa [#allocation6 + $0x1], 0 }
   0x3   :  { %12 = vsyncpa [#allocation4], 0 }
   0x4   :  { %14 = vsyncpa [#allocation4 + $0x1], 0  ;;  %s2018_s12 = smov 0   ;;  %s2020_s13 = smov 0  }
   0x5   :  { %s2022_s14 = smov 0   ;;  %s2024_s15 = smov 0  }
   0x6 LB: > { %s2039_s16 = sadd.s32 4294967295, %s1987_s15   ;;  %s1377_s17 = sadd.s32 4294967294, %s1987_s15   ;;  %s1987_s15 = sphi %s2024_s15, %s2790_s15   ;;  %s1983_s14 = sphi %s2022_s14, %s2789_s14   ;;  %s1979_s13 = sphi %s2020_s13, %s2788_s13   ;;  %s1975_s12 = sphi %s2018_s12, %s2787_s12  }
   0x7   : > { %p61_p0 = scmp.ne.s32.totalorder %s1979_s13, %s1975_s12  ;;  %p2749_p1 = scmp.eq.s32.totalorder %s2039_s16, 0 }
   0x8   : > { %p112_p3 = scmp.eq.s32.totalorder %s1377_s17, 1  ;;  %p1378_p5 = scmp.ge.s32.totalorder %s1987_s15, 1 }
   0x9   : > { %p2048_p4 = por %p2749_p1, %p61_p0  ;;  %p119_p7 = scmp.lt.s32.totalorder %s1987_s15, 3 }
   0xa   : > { %p2053_p6 = por %p112_p3, %p61_p0  ;;  %s1989_s21 = smov [#allocation7]  }
   0xb   : > { %s2757_s18 = scalar_select %p2048_p4, 1, 0 }
   0xc   : > { %s2758_s19 = scalar_select %p2053_p6, 1, 0 }
   0xd   : > { %p2058_p8 = pnand %p1378_p5, %p119_p7  ;;  %s142_s22 = sshll.u32 %s1989_s21, 4  ;;  %s2062_s22 = int_to_ptr.vmem [resolvable:$true] %s142_s22 }
   0xe   : > { %s1990_s24 = smov [#allocation2]   ;;  %s1827_s28 = scalar_lea.hbm %s2747_s2, 18432 }
   0xf   : > { %p1763_p9 = pneg %p2058_p8  ;;  %s132_s25 = sshll.u32 %s1990_s24, 4  ;;  %s2073_s25 = int_to_ptr.vmem [resolvable:$true] %s132_s25 }
  0x10   : > { %p1828_p12 = scmp.ne.s32.totalorder %s2747_s2, %s1827_s28  ;;  %p1834_p5 = scmp.lt.u32.totalorder %s1827_s28, %s2747_s2 }
  0x11   : > { %p2069_p11 = pnand %p1763_p9, %p2749_p1 }
  0x13   : > { %p1829_p13 = pneg %p2069_p11 }
  0x15   : > { %p1830_p0 = pnand %p1829_p13, %p1828_p12 }
  0x17   : > { %p1831_p3 = pneg %p1830_p0 }
  0x19   : > { %p1836_p7 = pnand %p1834_p5, %p1831_p3 }
  0x1b   : > { %1839 = shalt.err (!%p1836_p7)
}
  0x1c   : > { %s1840_s6 = scalar_lea.vmem %s2062_s22, 18432  ;;  %p1848_p2 = scmp.lt.s32.totalorder %s2062_s22, %s2062_s22 }
  0x1d   : > { %p1841_p9 = scmp.ne.s32.totalorder %s2062_s22, %s1840_s6  ;;  %p1849_p12 = scmp.lt.s32.totalorder %s1840_s6, %s1840_s6 }
  0x1f   : > { %p1843_p10 = pnand %p1841_p9, %p1829_p13  ;;  %p1850_p0 = por %p1849_p12, %p1848_p2 }
  0x21   : > { %p1844_p1 = pneg %p1843_p10 }
  0x23   : > { %p1851_p6 = pnand %p1850_p0, %p1844_p1 }
  0x25   : > { %1854 = shalt.err (!%p1851_p6)
}
  0x26   : > { %s1991_s7 = smov 128   ;;  %s1992_s8 = smov 8  }
  0x27   : > { %1769 = dma.hbm_to_vmem [thread:$0]  (!%p2069_p11), %s2747_s2, 18432, %s2062_s22, [#allocation6], %s1991_s7, %s1991_s7, %s1992_s8  }
  0x28   : > { %s1855_s21 = scalar_lea.hbm %s2745_s0, 1056 }
  0x29   : > { %p1856_p2 = scmp.ne.s32.totalorder %s2745_s0, %s1855_s21  ;;  %p1862_p10 = scmp.lt.u32.totalorder %s1855_s21, %s2745_s0 }
  0x2b   : > { %p1858_p1 = pnand %p1856_p2, %p1829_p13 }
  0x2d   : > { %p1859_p6 = pneg %p1858_p1 }
  0x2f   : > { %p1864_p3 = pnand %p1862_p10, %p1859_p6 }
  0x31   : > { %1867 = shalt.err (!%p1864_p3)
}
  0x32   : > { %s1868_s22 = scalar_lea.vmem %s2073_s25, 1056  ;;  %p1876_p12 = scmp.lt.s32.totalorder %s2073_s25, %s2073_s25 }
  0x33   : > { %p1869_p5 = scmp.ne.s32.totalorder %s2073_s25, %s1868_s22  ;;  %p1877_p0 = scmp.lt.s32.totalorder %s1868_s22, %s1868_s22 }
  0x35   : > { %p1871_p7 = pnand %p1869_p5, %p1829_p13  ;;  %p1878_p2 = por %p1877_p0, %p1876_p12 }
  0x37   : > { %p1872_p9 = pneg %p1871_p7 }
  0x39   : > { %p1879_p1 = pnand %p1878_p2, %p1872_p9 }
  0x3b   : > { %1882 = shalt.err (!%p1879_p1)
}
  0x3c   : > { %1766 = dma.hbm_to_vmem [thread:$0]  (!%p2069_p11), %s2745_s0, 1056, %s2073_s25, [#allocation3]  }
  0x3d   : > { %s2128_s4 = sadd.s32 1, %s1987_s15   ;;  %s48_s23 = sadd.s32 1, %s1983_s14 }
  0x3e   : > { %s45_s5 = ssub.s32 %s1987_s15, %s2128_s4  ;;  %p55_p13 = scmp.ne.s32.totalorder %s1983_s14, %s1979_s13 }
  0x3f   : > { %p46_p6 = scmp.eq.s32.totalorder %s45_s5, 0  ;;  %p56_p10 = scmp.eq.s32.totalorder %s1987_s15, 0 }
  0x40   : > { %p2761_p3 = scmp.eq.s32.totalorder %s2039_s16, 1  ;;  %p1780_p7 = scmp.lt.s32.totalorder %s1987_s15, 2 }
  0x41   : > { %s2144_s7 = scalar_select %p46_p6, %s1983_s14, %s48_s23  }
  0x42   : > { %p2138_p5 = por %p2761_p3, %p55_p13  ;;  %p57_p9 = por %p56_p10, %p55_p13 }
  0x43   : > { %s156_s8 = sand.u32 1, %s1987_s15   ;;  %s158_s9 = sand.u32 1, %s1983_s14  }
  0x44   : > { %s2762_s6 = scalar_select %p2138_p5, 1, 0 }
  0x45   : > { %s1382_s25 = sshll.u32 %s158_s9, 3  ;;  %s1383_s10 = sshll.u32 %s1987_s15, 7 }
  0x46   : > { %s2152_s21 = scalar_lea.hbm %s2746_s1, %s1383_s10  ;;  %s160_s24 = scalar_lea.vmem [#allocation5], %s1382_s25 }
  0x47   : > { %s167_s26 = sshll.u32 %s160_s24, 4  ;;  %p2154_p11 = pnand %p1780_p7, %p57_p9  ;;  %s2158_s26 = int_to_ptr.vmem [resolvable:$true] %s167_s26 }
  0x48   : > { %s157_s28 = scalar_lea.sflag [#allocation6], %s156_s8  ;;  %s1883_s22 = scalar_lea.hbm %s2152_s21, 128 }
  0x49   : > { %p1884_p12 = scmp.ne.s32.totalorder %s2152_s21, %s1883_s22  ;;  %p1885_p0 = pneg %p2154_p11 }
  0x4a   : > { %s1888_s23 = scalar_lea.hbm %s2746_s1, 256  ;;  %p1889_p13 = scmp.lt.u32.totalorder %s2152_s21, %s2746_s1 }
  0x4b   : > { %p1886_p2 = pnand %p1885_p0, %p1884_p12  ;;  %p1890_p6 = scmp.lt.u32.totalorder %s1888_s23, %s1883_s22 }
  0x4c   : > { %p1892_p3 = scmp.lt.u32.totalorder %s1883_s22, %s2152_s21 }
  0x4d   : > { %p1887_p1 = pneg %p1886_p2  ;;  %p1891_p10 = por %p1890_p6, %p1889_p13 }
  0x4f   : > { %p1893_p7 = por %p1892_p3, %p1891_p10 }
  0x51   : > { %p1894_p9 = pnand %p1893_p7, %p1887_p1 }
  0x53   : > { %1897 = shalt.err (!%p1894_p9)
}
  0x54   : > { %s1898_s8 = scalar_lea.vmem %s2158_s26, 128  ;;  %s1993_s25 = smov [#allocation5]  }
  0x55   : > { %p1899_p12 = scmp.ne.s32.totalorder %s2158_s26, %s1898_s8  ;;  %s1903_s10 = sshll.u32 %s1993_s25, 4  ;;  %s1904_s10 = int_to_ptr.vmem [resolvable:$false] %s1903_s10 }
  0x56   : > { %s1905_s11 = scalar_lea.vmem %s1904_s10, 256  ;;  %p1906_p4 = scmp.lt.s32.totalorder %s2158_s26, %s1904_s10 }
  0x57   : > { %p1901_p2 = pnand %p1899_p12, %p1885_p0  ;;  %p1907_p13 = scmp.lt.s32.totalorder %s1905_s11, %s1898_s8 }
  0x59   : > { %p1902_p5 = pneg %p1901_p2  ;;  %p1908_p6 = por %p1907_p13, %p1906_p4 }
  0x5b   : > { %p1909_p10 = pnand %p1908_p6, %p1902_p5 }
  0x5d   : > { %1912 = shalt.err (!%p1909_p10)
}
  0x5e   : > { %1773 = dma.hbm_to_vmem [thread:$0]  (!%p2154_p11), %s2152_s21, 128, %s2158_s26, %s157_s28  }
  0x5f   : > { %176 = sbr.rel (%p2058_p8) target bundleno = 479 (0x1df), region = 32 }
  0x66   : > { %p2764_p0 = scmp.eq.s32.totalorder %s2039_s16, 0 }
  0x68   : > { %1958 = dma.done.wait (%p2764_p0), [#allocation3], 1056   ;;  %p2765_p1 = pmov %p2764_p0 }
  0x69   : > { %s182_s17 = sand.u32 1, %s2039_s16   ;;  %s184_s24 = sand.u32 1, %s1979_s13  }
  0x6a   : > { %1960 = vsyncadd (%p2765_p1), [#allocation3], 4294966240  ;;  %s2195_s27 = sshll.u32 %s184_s24, 3  ;;  %s183_s21 = scalar_lea.sflag [#allocation6], %s182_s17 }
  0x6b   : > { %s186_s26 = scalar_lea.vmem [#allocation5], %s2195_s27  ;;  %p2766_p4 = scmp.ne.s32.totalorder %s2757_s18, 0 }
  0x6d   : > { %1962 = dma.done.wait (%p2766_p4), %s183_s21, 128  }
  0x6e   : > { %1964 = vsyncadd (%p2766_p4), %s183_s21, 4294967168  ;;  %p2767_p8 = pmov %p2764_p0 }
  0x6f   : > { %p2768_p5 = pmov %p2764_p0 }
  0x70   : > { %1966 = dma.done.wait (%p2767_p8), [#allocation6], 18432  }
  0x71   : > { %1968 = vsyncadd (%p2768_p5), [#allocation6], 4294948864  ;;  %v793_v0 = vld [vmem:[#allocation7 + $0x80] sm:$0xff]  ;;  %v794_v1 = vld [vmem:[#allocation7 + $0x88] sm:$0xff]  ;;  %v218_v47 = vlaneseq  ;;  %s1404_s18 = sshll.u32 %s2039_s16, 7  ;;  %s212_s20 = scalar_lea.vmem [#allocation8], %s2195_s27 }
  0x72   : > { %v825_v2 = vld [vmem:[#allocation7 + $0x180] sm:$0xff]  ;;  %v1599_v3 = vpack.c.bf16 %v794_v1, %v793_v0  ;;  %v826_v4 = vld [vmem:[#allocation7 + $0x188] sm:$0xff]  ;;  %v795_v11 = vld [vmem:[#allocation7 + $0x90] sm:$0xff]  ;;  %s1286_s28 = sshll.u32 %s212_s20, 4  ;;  %s2700_s30 = scalar_lea.hbm %s2748_s3, %s1404_s18  ;;  %s2702_s28 = int_to_ptr.vmem [resolvable:$true] %s1286_s28 }
  0x73   : > { %v777_v5 = vld [vmem:[#allocation7] sm:$0xff]  ;;  %v778_v6 = vld [vmem:[#allocation7 + $0x8] sm:$0xff]  ;;  %v1631_v7 = vpack.c.bf16 %v826_v4, %v825_v2  ;;  %v796_v13 = vld [vmem:[#allocation7 + $0x98] sm:$0xff]  ;;  %v2206_v0 = vshrl.u32 %v218_v47, 7  ;;  %s1273_s23 = scalar_lea.sflag [#allocation4], %s184_s24  ;;  %s1913_s5 = scalar_lea.vmem %s2702_s28, 128 }
  0x74   : > { %v1601_v8 = vpack.c.bf16 %v778_v6, %v777_v5  ;;  %v809_v9 = vld [vmem:[#allocation7 + $0x100] sm:$0xff]  ;;  %v810_v10 = vld [vmem:[#allocation7 + $0x108] sm:$0xff]  ;;  %1600 = vmatprep.subr.bf16.mxu0 %v1599_v3  ;;  %v827_v14 = vld [vmem:[#allocation7 + $0x190] sm:$0xff]  ;;  %v1603_v16 = vpack.c.bf16 %v796_v13, %v795_v11  ;;  %p1914_p11 = scmp.ne.s32.totalorder %s2702_s28, %s1913_s5  ;;  %p2784_p3 = scmp.ne.s32.totalorder %s2762_s6, 0 }
  0x75   : > { %v1633_v12 = vpack.c.bf16 %v810_v10, %v809_v9  ;;  %v828_v15 = vld [vmem:[#allocation7 + $0x198] sm:$0xff]  ;;  %1632 = vmatprep.subr.bf16.mxu1 %v1631_v7  ;;  %v779_v18 = vld [vmem:[#allocation7 + $0x10] sm:$0xff]  ;;  %v797_v23 = vld [vmem:[#allocation7 + $0xa0] sm:$0xff]  ;;  %s1997_s16 = smov [#allocation8]  }
  0x76   : > { %1602 = vmatpush3.bf16.msra.mxu0 %v1601_v8  ;;  %v1635_v17 = vpack.c.bf16 %v828_v15, %v827_v14  ;;  %v780_v19 = vld [vmem:[#allocation7 + $0x18] sm:$0xff]  ;;  %v811_v20 = vld [vmem:[#allocation7 + $0x110] sm:$0xff]  ;;  %v798_v24 = vld [vmem:[#allocation7 + $0xa8] sm:$0xff]  ;;  %p1915_p7 = pnand %p1914_p11, %p2784_p3  ;;  %s1917_s9 = sshll.u32 %s1997_s16, 4  ;;  %s1918_s9 = int_to_ptr.vmem [resolvable:$false] %s1917_s9 }
  0x77   : > { %1634 = vmatpush3.bf16.msra.mxu1 %v1633_v12  ;;  %v1605_v21 = vpack.c.bf16 %v780_v19, %v779_v18  ;;  %v812_v22 = vld [vmem:[#allocation7 + $0x118] sm:$0xff]  ;;  %1604 = vmatprep.subr.bf16.mxu0 %v1603_v16  ;;  %v1607_v26 = vpack.c.bf16 %v798_v24, %v797_v23  ;;  %v829_v27 = vld [vmem:[#allocation7 + $0x1a0] sm:$0xff]  ;;  %v830_v28 = vld [vmem:[#allocation7 + $0x1a8] sm:$0xff]  ;;  %v2222_v18 = vsub.s32 1, %v2206_v0  ;;  %v2225_v19 = vsub.s32 2, %v2206_v0  ;;  %s1919_s8 = scalar_lea.vmem %s1918_s9, 256  ;;  %p1920_p12 = scmp.lt.s32.totalorder %s2702_s28, %s1918_s9 }
  0x78   : > { %1636 = vmatprep.subr.bf16.mxu1 %v1635_v17  ;;  %v1637_v25 = vpack.c.bf16 %v812_v22, %v811_v20  ;;  %v781_v29 = vld [vmem:[#allocation7 + $0x20] sm:$0xff]  ;;  %v1639_v30 = vpack.c.bf16 %v830_v28, %v829_v27  ;;  %v782_v31 = vld [vmem:[#allocation7 + $0x28] sm:$0xff]  ;;  %v799_v35 = vld [vmem:[#allocation7 + $0xb0] sm:$0xff]  ;;  %v2219_v17 = vsub.s32 0, %v2206_v0  ;;  %p1916_p9 = pneg %p1915_p7  ;;  %p1921_p2 = scmp.lt.s32.totalorder %s1919_s8, %s1913_s5 }
  0x79   : > { %v813_v32 = vld [vmem:[#allocation7 + $0x120] sm:$0xff]  ;;  %v814_v33 = vld [vmem:[#allocation7 + $0x128] sm:$0xff]  ;;  %v1609_v34 = vpack.c.bf16 %v782_v31, %v781_v29  ;;  %v800_v36 = vld [vmem:[#allocation7 + $0xb8] sm:$0xff] }
  0x7a   : > { %1606 = vmatpush3.bf16.msra.mxu0 %v1605_v21  ;;  %v831_v37 = vld [vmem:[#allocation7 + $0x1b0] sm:$0xff]  ;;  %v1641_v38 = vpack.c.bf16 %v814_v33, %v813_v32  ;;  %v1611_v39 = vpack.c.bf16 %v800_v36, %v799_v35  ;;  %v832_v40 = vld [vmem:[#allocation7 + $0x1b8] sm:$0xff]  ;;  %v801_v46 = vld [vmem:[#allocation7 + $0xc0] sm:$0xff]  ;;  %p1922_p13 = por %p1921_p2, %p1920_p12 }
  0x7b   : > { %1638 = vmatpush3.bf16.msra.mxu1 %v1637_v25  ;;  %1608 = vmatprep.subr.bf16.mxu0 %v1607_v26  ;;  %v783_v41 = vld [vmem:[#allocation7 + $0x30] sm:$0xff]  ;;  %v784_v42 = vld [vmem:[#allocation7 + $0x38] sm:$0xff]  ;;  %v1643_v43 = vpack.c.bf16 %v832_v40, %v831_v37  ;;  %v802_v48 = vld [vmem:[#allocation7 + $0xc8] sm:$0xff]  ;;  %v2234_v25 = vsub.s32 3, %v2206_v0  ;;  %v2237_v26 = vsub.s32 4, %v2206_v0 }
  0x7c   : > { %1640 = vmatprep.subr.bf16.mxu1 %v1639_v30  ;;  %v815_v44 = vld [vmem:[#allocation7 + $0x130] sm:$0xff]  ;;  %v816_v45 = vld [vmem:[#allocation7 + $0x138] sm:$0xff]  ;;  %v833_v49 = vld [vmem:[#allocation7 + $0x1c0] sm:$0xff]  ;;  %v1613_v51 = vpack.c.bf16 %v784_v42, %v783_v41  ;;  %v1615_v56 = vpack.c.bf16 %v802_v48, %v801_v46  ;;  %p1923_p6 = pnand %p1922_p13, %p1916_p9 }
  0x7d   : > { %v834_v50 = vld [vmem:[#allocation7 + $0x1c8] sm:$0xff]  ;;  %v785_v52 = vld [vmem:[#allocation7 + $0x40] sm:$0xff]  ;;  %v1645_v55 = vpack.c.bf16 %v816_v45, %v815_v44  ;;  %v803_v58 = vld [vmem:[#allocation7 + $0xd0] sm:$0xff] }
  0x7e   : > { %1610 = vmatpush3.bf16.msra.mxu0 %v1609_v34  ;;  %v786_v53 = vld [vmem:[#allocation7 + $0x48] sm:$0xff]  ;;  %v817_v54 = vld [vmem:[#allocation7 + $0x140] sm:$0xff]  ;;  %v804_v59 = vld [vmem:[#allocation7 + $0xd8] sm:$0xff]  ;;  %v1647_v60 = vpack.c.bf16 %v834_v50, %v833_v49 }
  0x7f   : > { %1642 = vmatpush3.bf16.msra.mxu1 %v1641_v38  ;;  %1612 = vmatprep.subr.bf16.mxu0 %v1611_v39  ;;  %v818_v57 = vld [vmem:[#allocation7 + $0x148] sm:$0xff]  ;;  %v835_v61 = vld [vmem:[#allocation7 + $0x1d0] sm:$0xff]  ;;  %v836_v62 = vld [vmem:[#allocation7 + $0x1d8] sm:$0xff]  ;;  %v1617_v4 = vpack.c.bf16 %v786_v53, %v785_v52  ;;  %v1619_v9 = vpack.c.bf16 %v804_v59, %v803_v58  ;;  %v2260_v39 = vsub.s32 5, %v2206_v0  ;;  %v2306_v58 = vsub.s32 6, %v2206_v0 }
  0x80   : > { %1644 = vmatprep.subr.bf16.mxu1 %v1643_v43  ;;  %v787_v63 = vld [vmem:[#allocation7 + $0x50] sm:$0xff]  ;;  %v788_v1 = vld [vmem:[#allocation7 + $0x58] sm:$0xff]  ;;  %v805_v5 = vld [vmem:[#allocation7 + $0xe0] sm:$0xff]  ;;  %v1649_v8 = vpack.c.bf16 %v818_v57, %v817_v54  ;;  %v1651_v13 = vpack.c.bf16 %v836_v62, %v835_v61 }
  0x81   : > { %v819_v2 = vld [vmem:[#allocation7 + $0x150] sm:$0xff]  ;;  %v820_v3 = vld [vmem:[#allocation7 + $0x158] sm:$0xff]  ;;  %v806_v6 = vld [vmem:[#allocation7 + $0xe8] sm:$0xff]  ;;  %v1621_v20 = vpack.c.bf16 %v788_v1, %v787_v63 }
  0x82   : > { %1614 = vmatpush3.bf16.msra.mxu0 %v1613_v51  ;;  %v837_v7 = vld [vmem:[#allocation7 + $0x1e0] sm:$0xff]  ;;  %v838_v10 = vld [vmem:[#allocation7 + $0x1e8] sm:$0xff]  ;;  %v2216_v16 = vld [vmem:[#allocation7 + $0xf0] sm:$0xff]  ;;  %v1653_v21 = vpack.c.bf16 %v820_v3, %v819_v2  ;;  %v1623_v27 = vpack.c.bf16 %v806_v6, %v805_v5 }
  0x83   : > { %1646 = vmatpush3.bf16.msra.mxu1 %v1645_v55  ;;  %1616 = vmatprep.subr.bf16.mxu0 %v1615_v56  ;;  %v2208_v11 = vld [vmem:[#allocation7 + $0x60] sm:$0xff]  ;;  %v2210_v12 = vld [vmem:[#allocation7 + $0x68] sm:$0xff]  ;;  %v2227_v22 = vld [vmem:[#allocation7 + $0xf8] sm:$0xff]  ;;  %v1655_v28 = vpack.c.bf16 %v838_v10, %v837_v7 }
  0x84   : > { %1648 = vmatprep.subr.bf16.mxu1 %v1647_v60  ;;  %v2212_v14 = vld [vmem:[#allocation7 + $0x160] sm:$0xff]  ;;  %v2214_v15 = vld [vmem:[#allocation7 + $0x168] sm:$0xff]  ;;  %v2229_v23 = vld [vmem:[#allocation7 + $0x1f0] sm:$0xff]  ;;  %v1625_v29 = vpack.c.bf16 %v2210_v12, %v2208_v11  ;;  %v1627_v34 = vpack.c.bf16 %v2227_v22, %v2216_v16  ;;  %v2752_v60 = vmov 0.0  }
  0x85   : > { %v2231_v24 = vld [vmem:[#allocation7 + $0x1f8] sm:$0xff]  ;;  %v1657_v30 = vpack.c.bf16 %v2214_v15, %v2212_v14  ;;  %v2243_v31 = vld [vmem:[#allocation7 + $0x70] sm:$0xff]  ;;  %v2272_v45 = vld [vmem:[#allocation2 + $0x16] sm:$0xff] }
  0x86   : > { %1618 = vmatpush3.bf16.msra.mxu0 %v1617_v4  ;;  %v2245_v32 = vld [vmem:[#allocation7 + $0x78] sm:$0xff]  ;;  %v2247_v33 = vld [vmem:[#allocation7 + $0x170] sm:$0xff]  ;;  %v1659_v35 = vpack.c.bf16 %v2231_v24, %v2229_v23  ;;  %v416_v57 = vrot.slane %v2272_v45, %v2219_v17  ;;  %v420_v3 = vrot.slane %v2272_v45, %v2222_v18  ;;  %v424_v4 = vrot.slane %v2272_v45, %v2225_v19  ;;  %v2339_v11 = vld [vmem:[#allocation2 + $0x32] sm:$0xff] }
  0x87   : > { %1650 = vmatpush3.bf16.msra.mxu1 %v1649_v8  ;;  %1620 = vmatprep.subr.bf16.mxu0 %v1619_v9  ;;  %v1629_v36 = vpack.c.bf16 %v2245_v32, %v2243_v31  ;;  %v2255_v37 = vld [vmem:[#allocation7 + $0x178] sm:$0xff]  ;;  %v2257_v38 = vld [vmem:[#allocation2] sm:$0xff] }
  0x88   : > { %1652 = vmatprep.subr.bf16.mxu1 %v1651_v13  ;;  %v1661_v40 = vpack.c.bf16 %v2255_v37, %v2247_v33  ;;  %v221_v41 = vrot.slane %v2257_v38, %v2219_v17  ;;  %v225_v42 = vrot.slane %v2257_v38, %v2222_v18  ;;  %v229_v43 = vrot.slane %v2257_v38, %v2225_v19  ;;  %v2270_v44 = vld [vmem:[#allocation2 + $0xc] sm:$0xff]  ;;  %v2316_v59 = vld [vmem:[#allocation2 + $0x20] sm:$0xff] }
  0x89   : > { %v2276_v46 = vld [vmem:[%s186_s26] sm:$0xff]  ;;  %v233_v47 = vrot.slane %v2257_v38, %v2234_v25  ;;  %v237_v48 = vrot.slane %v2257_v38, %v2237_v26  ;;  %v354_v49 = vrot.slane %v2270_v44, %v2219_v17  ;;  %v358_v50 = vrot.slane %v2270_v44, %v2222_v18  ;;  %v2344_v16 = vld [vmem:[#allocation2 + $0x3a] sm:$0xff] }
  0x8a   : > { %1622 = vmatpush3.bf16.msra.mxu0 %v1621_v20  ;;  %v2287_v51 = vsub.f32 %v2276_v46, %v221_v41  ;;  %v2290_v52 = vsub.f32 %v2276_v46, %v225_v42  ;;  %v2293_v53 = vsub.f32 %v2276_v46, %v229_v43  ;;  %v362_v54 = vrot.slane %v2270_v44, %v2225_v19  ;;  %v2330_v6 = vld [vmem:[#allocation2 + $0x29] sm:$0xff] }
  0x8b   : > { %1654 = vmatpush3.bf16.msra.mxu1 %v1653_v21  ;;  %1624 = vmatprep.subr.bf16.mxu0 %v1623_v27  ;;  %v2298_v55 = vsub.f32 %v2276_v46, %v233_v47  ;;  %v2301_v56 = vsub.f32 %v2276_v46, %v237_v48  ;;  %v512_v10 = vrot.slane %v2316_v59, %v2219_v17 }
  0x8c   : > { %1656 = vmatprep.subr.bf16.mxu1 %v1655_v28  ;;  %vm290_vm0 = vcmp.ge.f32.partialorder %v2287_v51, 0.0  ;;  %vm291_vm1 = vcmp.ge.f32.partialorder %v2290_v52, 0.0  ;;  %vm292_vm2 = vcmp.ge.f32.partialorder %v2293_v53, 0.0  ;;  %vm301_vm3 = vcmp.lt.f32.partialorder %v2290_v52, 0.0 }
  0x8d   : > { %2769 = vst [vmem:[#allocation13_spill] sm:$0xff] %v2298_v55  ;;  %vm293_vm4 = vcmp.ge.f32.partialorder %v2298_v55, 0.0  ;;  %vm302_vm5 = vcmp.lt.f32.partialorder %v2293_v53, 0.0  ;;  %vm303_vm6 = vcmp.lt.f32.partialorder %v2298_v55, 0.0  ;;  %vm304_vm7 = vcmp.lt.f32.partialorder %v2301_v56, 0.0  ;;  %vm312_vm8 = vmand %vm290_vm0, %vm301_vm3 }
  0x8e   : > { %1626 = vmatpush3.bf16.msra.mxu0 %v1625_v29  ;;  %vm313_vm9 = vmand %vm291_vm1, %vm302_vm5  ;;  %v1389_v61 = vsel %vm312_vm8, 1.0, %v2752_v60  ;;  %v401_v62 = vmul.f32 %v354_v49, %v2287_v51  ;;  %v402_v63 = vmul.f32 %v358_v50, %v2290_v52  ;;  %v403_v1 = vmul.f32 %v362_v54, %v2293_v53 }
  0x8f   : > { %1658 = vmatpush3.bf16.msra.mxu1 %v1657_v30  ;;  %1628 = vmatprep.subr.bf16.mxu0 %v1627_v34  ;;  %vm314_vm10 = vmand %vm292_vm2, %vm303_vm6  ;;  %v1390_v2 = vsel %vm313_vm9, 1.0, %v2752_v60  ;;  %v463_v5 = vmul.f32 %v416_v57, %v2293_v53  ;;  %v464_v13 = vmul.f32 %v420_v3, %v2298_v55  ;;  %v465_v14 = vmul.f32 %v424_v4, %v2301_v56 }
  0x90   : > { %1660 = vmatprep.subr.bf16.mxu1 %v1659_v35  ;;  %vm315_vm11 = vmand %vm293_vm4, %vm304_vm7  ;;  %v1391_v7 = vsel %vm314_vm10, 1.0, %v2752_v60  ;;  %v473_v8 = vmul.f32 %v1389_v61, %v401_v62  ;;  %v474_v9 = vmul.f32 %v1390_v2, %v402_v63  ;;  %v516_v21 = vrot.slane %v2316_v59, %v2222_v18 }
  0x91   : > { %v1392_v12 = vsel %vm315_vm11, 1.0, %v2752_v60  ;;  %v475_v15 = vmul.f32 %v1391_v7, %v403_v1  ;;  %v483_v20 = vmul.f32 %v1390_v2, %v463_v5  ;;  %v554_v22 = vmul.f32 %v512_v10, %v2287_v51 }
  0x92   : > { %1630 = vmatpush3.bf16.msra.mxu0 %v1629_v36  ;;  %v568_v23 = vrot.slane %v2330_v6, %v2219_v17  ;;  %v484_v24 = vmul.f32 %v1391_v7, %v464_v13  ;;  %v485_v27 = vmul.f32 %v1392_v12, %v465_v14  ;;  %v572_v28 = vrot.slane %v2330_v6, %v2222_v18 }
  0x93   : > { %1662 = vmatpush3.bf16.msra.mxu1 %v1661_v40  ;;  %v652_v29 = vrot.slane %v2339_v11, %v2219_v17  ;;  %v493_v30 = vadd.f32 %v483_v20, %v473_v8  ;;  %v555_v31 = vmul.f32 %v516_v21, %v2290_v52  ;;  %v701_v34 = vrot.slane %v2344_v16, %v2219_v17 }
  0x94   : > { %v610_v32 = vmul.f32 %v568_v23, %v2298_v55  ;;  %v494_v35 = vadd.f32 %v484_v24, %v474_v9  ;;  %v495_v36 = vadd.f32 %v485_v27, %v475_v15  ;;  %v611_v33 = vmul.f32 %v572_v28, %v2301_v56 }
  0x95   : > { %v689_v37 = vmul.f32 %v652_v29, %v2287_v51  ;;  %v619_v40 = vmul.f32 %v554_v22, %v493_v30  ;;  %v738_v41 = vmul.f32 %v701_v34, %v2301_v56  ;;  %v241_v42 = vrot.slane %v2257_v38, %v2260_v39 }
  0x96   : > { %v245_v43 = vrot.slane %v2257_v38, %v2306_v58  ;;  %v620_v47 = vmul.f32 %v555_v31, %v494_v35  ;;  %v628_v48 = vmul.f32 %v610_v32, %v494_v35  ;;  %v629_v49 = vmul.f32 %v611_v33, %v495_v36  ;;  %v857_v33 = vld [vmem:[#allocation7 + $0x280] sm:$0xff] }
  0x97   : > { %vm294_vm12 = vcmp.ge.f32.partialorder %v2301_v56, 0.0  ;;  %v2374_v50 = vsub.f32 %v2276_v46, %v241_v42  ;;  %v366_v51 = vrot.slane %v2270_v44, %v2234_v25  ;;  %v370_v57 = vrot.slane %v2270_v44, %v2237_v26 }
  0x98   : > { %v2377_v54 = vsub.f32 %v2276_v46, %v245_v43  ;;  %v637_v61 = vadd.f32 %v628_v48, %v619_v40  ;;  %v638_v62 = vadd.f32 %v629_v49, %v620_v47  ;;  %v428_v63 = vrot.slane %v2272_v45, %v2234_v25  ;;  %v889_v47 = vld [vmem:[#allocation7 + $0x380] sm:$0xff]  ;;  %v890_v48 = vld [vmem:[#allocation7 + $0x388] sm:$0xff] }
  0x99   : > { %vm295_vm13 = vcmp.ge.f32.partialorder %v2374_v50, 0.0  ;;  %vm305_vm14 = vcmp.lt.f32.partialorder %v2374_v50, 0.0  ;;  %v404_v1 = vmul.f32 %v366_v51, %v2298_v55  ;;  %v405_v4 = vmul.f32 %v370_v57, %v2301_v56 }
  0x9a   : > { %vm306_vm15 = vcmp.lt.f32.partialorder %v2377_v54, 0.0  ;;  %v746_v2 = vmul.f32 %v689_v37, %v637_v61  ;;  %v754_v3 = vmul.f32 %v738_v41, %v638_v62  ;;  %vm316_vm0 = vmand %vm294_vm12, %vm305_vm14  ;;  %v432_v7 = vrot.slane %v2272_v45, %v2237_v26  ;;  %v858_v37 = vld [vmem:[#allocation7 + $0x288] sm:$0xff] }
  0x9b   : > { %vm317_vm1 = vmand %vm295_vm13, %vm306_vm15  ;;  %v1393_v5 = vsel %vm316_vm0, 1.0, %v2752_v60  ;;  %v466_v8 = vmul.f32 %v428_v63, %v2374_v50  ;;  %v476_v9 = vmul.f32 %v1392_v12, %v404_v1  ;;  %v520_v14 = vrot.slane %v2316_v59, %v2225_v19 }
  0x9c   : > { %v762_v10 = vadd.f32 %v754_v3, %v746_v2  ;;  %v2395_v13 = vsel %vm317_vm1, 1.0, %v2752_v60  ;;  %v1402_v15 = vmul.f32 -1.442695, %v2276_v46  ;;  %v467_v20 = vmul.f32 %v432_v7, %v2377_v54  ;;  %v873_v7 = vld [vmem:[#allocation7 + $0x300] sm:$0xff] }
  0x9d   : > { %v477_v21 = vmul.f32 %v1393_v5, %v405_v4  ;;  %v486_v22 = vmul.f32 %v1393_v5, %v466_v8  ;;  %v524_v23 = vrot.slane %v2316_v59, %v2234_v25  ;;  %v556_v24 = vmul.f32 %v520_v14, %v2293_v53  ;;  %v874_v8 = vld [vmem:[#allocation7 + $0x308] sm:$0xff] }
  0x9e   : > { %985 = vmatprep.mubr.f32.mxu0 %v762_v10  ;;  %v576_v12 = vrot.slane %v2330_v6, %v2225_v19  ;;  %v580_v27 = vrot.slane %v2330_v6, %v2234_v25  ;;  %v660_v28 = vrot.slane %v2339_v11, %v2225_v19  ;;  %v487_v29 = vmul.f32 %v2395_v13, %v467_v20  ;;  %v2433_v20 = vld [vmem:[#allocation7 + $0x208] sm:$0xff] }
  0x9f   : > { %v496_v30 = vadd.f32 %v486_v22, %v476_v9  ;;  %v557_v31 = vmul.f32 %v524_v23, %v2298_v55  ;;  %v621_v35 = vmul.f32 %v556_v24, %v495_v36  ;;  %v709_v43 = vrot.slane %v2344_v16, %v2225_v19  ;;  %v2437_v22 = vld [vmem:[#allocation7 + $0x298] sm:$0xff]  ;;  %v891_v24 = vld [vmem:[#allocation7 + $0x390] sm:$0xff] }
  0xa0   : > { %v612_v32 = vmul.f32 %v576_v12, %v2374_v50  ;;  %v613_v34 = vmul.f32 %v580_v27, %v2377_v54  ;;  %v2414_v40 = vadd.f32 %v487_v29, %v477_v21  ;;  %v691_v42 = vmul.f32 %v660_v28, %v2293_v53  ;;  %v2435_v21 = vld [vmem:[#allocation7 + $0x290] sm:$0xff]  ;;  %v2441_v23 = vld [vmem:[#allocation7 + $0x218] sm:$0xff] }
  0xa1   : > { %v622_v41 = vmul.f32 %v557_v31, %v496_v30  ;;  %1823 = vpow2.f32 %v1402_v15  ;;  %v656_v51 = vrot.slane %v2339_v11, %v2222_v18  ;;  %v705_v36 = vrot.slane %v2344_v16, %v2222_v18  ;;  %v2431_v15 = vld [vmem:[#allocation7 + $0x200] sm:$0xff]  ;;  %v892_v12 = vld [vmem:[#allocation7 + $0x398] sm:$0xff]  ;;  %v875_v28 = vld [vmem:[#allocation7 + $0x310] sm:$0xff] }
  0xa2   : > { %v630_v49 = vmul.f32 %v612_v32, %v496_v30  ;;  %v374_v57 = vrot.slane %v2270_v44, %v2260_v39  ;;  %v631_v61 = vmul.f32 %v613_v34, %v2414_v40  ;;  %v740_v53 = vmul.f32 %v709_v43, %v2377_v54  ;;  %v876_v29 = vld [vmem:[#allocation7 + $0x318] sm:$0xff]  ;;  %v2445_v30 = vld [vmem:[#allocation7 + $0x2a0] sm:$0xff]  ;;  %v2447_v31 = vld [vmem:[#allocation7 + $0x2a8] sm:$0xff] }
  0xa3   : > { %v1663_v63 = vpack.c.bf16 %v858_v37, %v857_v33  ;;  %v690_v2 = vmul.f32 %v656_v51, %v2290_v52  ;;  %v739_v3 = vmul.f32 %v705_v36, %v2374_v50  ;;  %v1695_v4 = vpack.c.bf16 %v890_v48, %v889_v47  ;;  %v2439_v52 = vld [vmem:[#allocation7 + $0x210] sm:$0xff]  ;;  %v2449_v32 = vld [vmem:[#allocation7 + $0x220] sm:$0xff]  ;;  %v894_v37 = vld [vmem:[#allocation7 + $0x3a8] sm:$0xff] }
  0xa4   : > { %v639_v1 = vadd.f32 %v630_v49, %v621_v35  ;;  %v2429_v5 = vadd.f32 %v631_v61, %v622_v41  ;;  %v406_v27 = vmul.f32 %v374_v57, %v2374_v50  ;;  %v2451_v35 = vld [vmem:[#allocation7 + $0x228] sm:$0xff]  ;;  %v893_v33 = vld [vmem:[#allocation7 + $0x3a0] sm:$0xff]  ;;  %v2457_v48 = vld [vmem:[#allocation7 + $0x2b0] sm:$0xff]  ;;  %v1699_v49 = vpack.c.bf16 %v892_v12, %v891_v24 }
  0xa5   : > { %1664 = vmatprep.subr.bf16.mxu0 %v1663_v63  ;;  %v747_v10 = vmul.f32 %v690_v2, %v638_v62  ;;  %1696 = vmatprep.subr.bf16.mxu1 %v1695_v4  ;;  %v2453_v43 = vld [vmem:[#allocation7 + $0x320] sm:$0xff]  ;;  %v2455_v47 = vld [vmem:[#allocation7 + $0x328] sm:$0xff]  ;;  %v2459_v51 = vld [vmem:[#allocation7 + $0x2b8] sm:$0xff]  ;;  %v2466_v61 = vsub.s32 7, %v2206_v0  ;;  %v1701_v0 = vpack.c.bf16 %v876_v29, %v875_v28  ;;  %vm296_vm2 = vcmp.ge.f32.partialorder %v2377_v54, 0.0 }
  0xa6   : > { %2770 = vst [vmem:[#allocation14_spill] sm:$0xff] %v2429_v5  ;;  %v748_v9 = vmul.f32 %v691_v42, %v639_v1  ;;  %v755_v14 = vmul.f32 %v739_v3, %v639_v1  ;;  %v756_v62 = vmul.f32 %v740_v53, %v2429_v5  ;;  %v1697_v42 = vpack.c.bf16 %v874_v8, %v873_v7  ;;  %v2461_v36 = vld [vmem:[#allocation7 + $0x230] sm:$0xff]  ;;  %v2463_v57 = vld [vmem:[#allocation7 + $0x238] sm:$0xff] }
  0xa7   : > { %v2469_v53 = vmul.f32 %v2395_v13, %v406_v27  ;;  %v895_v3 = vld [vmem:[#allocation7 + $0x3b0] sm:$0xff]  ;;  %v896_v4 = vld [vmem:[#allocation7 + $0x3b8] sm:$0xff]  ;;  %v1705_v24 = vpack.c.bf16 %v2455_v47, %v2453_v43  ;;  %v249_v28 = vrot.slane %v2257_v38, %v2466_v61  ;;  %v897_v43 = vld [vmem:[#allocation7 + $0x3c0] sm:$0xff]  ;;  %v668_v13 = vrot.slane %v2339_v11, %v2237_v26 }
  0xa8   : > { %v763_v34 = vadd.f32 %v755_v14, %v747_v10  ;;  %v764_v41 = vadd.f32 %v756_v62, %v748_v9  ;;  %v2477_v7 = vld [vmem:[#allocation2 + $0x8] sm:$0xf]  ;;  %v1703_v10 = vpack.c.bf16 %v894_v37, %v893_v33  ;;  %v1707_v62 = vpack.c.bf16 %v896_v4, %v895_v3  ;;  %v898_v47 = vld [vmem:[#allocation7 + $0x3c8] sm:$0xff]  ;;  %v2500_v38 = vld [vmem:[#allocation7 + $0x340] sm:$0xff] }
  0xa9   : > { %v253_v29 = vrot.slane %v2477_v7, %v2219_v17  ;;  %v880_v33 = vld [vmem:[#allocation7 + $0x338] sm:$0xff]  ;;  %v378_v37 = vrot.slane %v2270_v44, %v2306_v58  ;;  %v528_v4 = vrot.slane %v2316_v59, %v2237_v26  ;;  %v2514_v27 = vld [vmem:[#allocation7 + $0x3d0] sm:$0xff]  ;;  %v2771_v5 = vmov 0.0  }
  0xaa   : > { %1055 = vmatprep.mubr.f32.mxu1 %v764_v41  ;;  %v436_v41 = vrot.slane %v2272_v45, %v2260_v39  ;;  %v2516_v12 = vld [vmem:[#allocation7 + $0x3d8] sm:$0xff]  ;;  %vm1996_vm1 = vmmov 0  }
  0xab   : > { %v1824_v8 = vpop.eup %1823  ;;  %1056 = vmatmul.mubr.f32.vlgmr.msra.gmra.mrb[0].mxu1 %v763_v34  ;;  %v879_v34 = vld [vmem:[#allocation7 + $0x330] sm:$0xff]  ;;  %v2506_v3 = vsub.f32 %v2276_v46, %v253_v29  ;;  %v407_v9 = vmul.f32 %v378_v37, %v2377_v54  ;;  %v588_v29 = vrot.slane %v2330_v6, %v2260_v39  ;;  %v1711_v37 = vpack.c.bf16 %v898_v47, %v897_v43  ;;  %v2543_v47 = vld [vmem:[#allocation2 + $0x14] sm:$0x3] }
  0xac   : > { %v773_v14 = vadd.f32 1.0, %v1824_v8  ;;  %1698 = vmatpush3.bf16.msra.mxu1 %v1697_v42  ;;  %v440_v42 = vrot.slane %v2272_v45, %v2306_v58  ;;  %v532_v8 = vrot.slane %v2316_v59, %v2260_v39  ;;  %v1709_v2 = vpack.c.bf16 %v880_v33, %v879_v34 }
  0xad   : > { %1700 = vmatprep.subr.bf16.mxu1 %v1699_v49  ;;  %v2503_v49 = vsub.f32 %v2276_v46, %v249_v28  ;;  %v584_v28 = vrot.slane %v2330_v6, %v2237_v26  ;;  %vm308_vm5 = vcmp.lt.f32.partialorder %v2506_v3, 0.0  ;;  %v558_v63 = vmul.f32 %v528_v4, %v2301_v56 }
  0xae   : > { %1825 = vrcp.f32 %v773_v14  ;;  %v2512_v14 = vld [vmem:[#allocation7 + $0x348] sm:$0xff]  ;;  %v469_v1 = vmul.f32 %v440_v42, %v2506_v3  ;;  %v1715_v60 = vpack.c.bf16 %v2516_v12, %v2514_v27  ;;  %v615_v12 = vmul.f32 %v588_v29, %v2506_v3  ;;  %v884_v29 = vld [vmem:[#allocation7 + $0x358] sm:$0xff] }
  0xaf   : > { %vm297_vm3 = vcmp.ge.f32.partialorder %v2503_v49, 0.0  ;;  %vm307_vm4 = vcmp.lt.f32.partialorder %v2503_v49, 0.0  ;;  %v614_v42 = vmul.f32 %v584_v28, %v2503_v49  ;;  %v693_v27 = vmul.f32 %v668_v13, %v2301_v56 }
  0xb0   : > { %1702 = vmatpush3.bf16.msra.mxu1 %v1701_v0  ;;  %v468_v0 = vmul.f32 %v436_v41, %v2503_v49  ;;  %vm318_vm6 = vmand %vm296_vm2, %vm307_vm4  ;;  %v559_v41 = vmul.f32 %v532_v8, %v2374_v50  ;;  %v717_v4 = vrot.slane %v2344_v16, %v2237_v26  ;;  %v623_v8 = vmul.f32 %v558_v63, %v2414_v40  ;;  %v2565_v40 = vld [vmem:[#allocation7 + $0x2c8] sm:$0xff] }
  0xb1   : > { %1704 = vmatprep.subr.bf16.mxu1 %v1703_v10  ;;  %v1713_v10 = vpack.c.bf16 %v2512_v14, %v2500_v38  ;;  %vm319_vm7 = vmand %vm297_vm3, %vm308_vm5  ;;  %v1395_v55 = vsel %vm318_vm6, 1.0, %v2771_v5  ;;  %vm298_vm8 = vcmp.ge.f32.partialorder %v2506_v3, 0.0  ;;  %v382_v56 = vrot.slane %v2270_v44, %v2466_v61  ;;  %v883_v44 = vld [vmem:[#allocation7 + $0x350] sm:$0xff] }
  0xb2   : > { %v2540_v34 = vsel %vm319_vm7, 1.0, %v2771_v5  ;;  %v479_v33 = vmul.f32 %v1395_v55, %v407_v9  ;;  %v488_v43 = vmul.f32 %v1395_v55, %v468_v0  ;;  %v257_v55 = vrot.slane %v2477_v7, %v2222_v18 }
  0xb3   : > { %v489_v38 = vmul.f32 %v2540_v34, %v469_v1  ;;  %v261_v9 = vrot.slane %v2477_v7, %v2225_v19  ;;  %v386_v26 = vrot.slane %v2543_v47, %v2219_v17 }
  0xb4   : > { %1706 = vmatpush3.bf16.msra.mxu1 %v1705_v24  ;;  %v498_v24 = vadd.f32 %v488_v43, %v2469_v53  ;;  %v2563_v53 = vld [vmem:[#allocation7 + $0x2c0] sm:$0xff]  ;;  %v2568_v19 = vsub.f32 %v2276_v46, %v257_v55  ;;  %v444_v55 = vrot.slane %v2272_v45, %v2466_v61 }
  0xb5   : > { %1708 = vmatprep.subr.bf16.mxu1 %v1707_v62  ;;  %v2556_v62 = vadd.f32 %v489_v38, %v479_v33  ;;  %v2571_v14 = vsub.f32 %v2276_v46, %v261_v9  ;;  %v2576_v33 = vld [vmem:[#allocation2 + $0x1e] sm:$0x3]  ;;  %v901_v43 = vld [vmem:[#allocation7 + $0x3e0] sm:$0xff]  ;;  %v2773_v9 = vpack.c.bf16 %v2433_v20, %v2431_v15  ;;  %v2774_v15 = vpack.c.bf16 %v2437_v22, %v2435_v21  ;;  %v887_v22 = vld [vmem:[#allocation7 + $0x370] sm:$0xff] }
  0xb6   : > { %v624_v63 = vmul.f32 %v559_v41, %v498_v24  ;;  %v632_v13 = vmul.f32 %v614_v42, %v498_v24  ;;  %v408_v41 = vmul.f32 %v382_v56, %v2503_v49  ;;  %v902_v42 = vld [vmem:[#allocation7 + $0x3e8] sm:$0xff]  ;;  %vm299_vm9 = vcmp.ge.f32.partialorder %v2568_v19, 0.0 }
  0xb7   : > { %v633_v0 = vmul.f32 %v615_v12, %v2556_v62  ;;  %vm309_vm10 = vcmp.lt.f32.partialorder %v2568_v19, 0.0  ;;  %vm310_vm11 = vcmp.lt.f32.partialorder %v2571_v14, 0.0  ;;  %v885_v12 = vld [vmem:[#allocation7 + $0x360] sm:$0xff]  ;;  %v1717_v56 = vpack.c.bf16 %v884_v29, %v883_v44 }
  0xb8   : > { %v1826_v1 = vpop.eup %1825  ;;  %1710 = vmatpush3.bf16.msra.mxu1 %v1709_v2  ;;  %v742_v2 = vmul.f32 %v717_v4, %v2506_v3  ;;  %v2579_v38 = vadd.f32 %v632_v13, %v623_v8  ;;  %v886_v4 = vld [vmem:[#allocation7 + $0x368] sm:$0xff]  ;;  %vm320_vm12 = vmand %vm298_vm8, %vm309_vm10  ;;  %v409_v8 = vmul.f32 %v386_v26, %v2506_v3  ;;  %v904_v13 = vld [vmem:[#allocation7 + $0x3f8] sm:$0xff]  ;;  %v448_v45 = vrot.slane %v2576_v33, %v2219_v17 }
  0xb9   : > { %v776_v28 = vmul.f32 %v1826_v1, %v2276_v46  ;;  %1712 = vmatprep.subr.bf16.mxu1 %v1711_v37  ;;  %v2586_v24 = vadd.f32 %v633_v0, %v624_v63  ;;  %v903_v1 = vld [vmem:[#allocation7 + $0x3f0] sm:$0xff]  ;;  %vm321_vm13 = vmand %vm299_vm9, %vm310_vm11  ;;  %v1397_v26 = vsel %vm320_vm12, 1.0, %v2771_v5  ;;  %v1719_v20 = vpack.c.bf16 %v902_v42, %v901_v43 }
  0xba   : > { %2772 = vst [vmem:[#allocation15_spill] sm:$0xff] %v2579_v38  ;;  %v470_v63 = vmul.f32 %v444_v55, %v2568_v19  ;;  %v1721_v44 = vpack.c.bf16 %v886_v4, %v885_v12  ;;  %v471_v29 = vmul.f32 %v448_v45, %v2571_v14  ;;  %v480_v0 = vmul.f32 %v2540_v34, %v408_v41  ;;  %v850_v45 = vld [vmem:[#allocation7 + $0x248] sm:$0xff] }
  0xbb   : > { %986 = vmatmul.mubr.f32.vlgmr.msra.gmra.mrb[0].mxu0 %v776_v28  ;;  %v750_v28 = vmul.f32 %v693_v27, %v2579_v38  ;;  %v2609_v27 = vsel %vm321_vm13, 1.0, %v2771_v5  ;;  %v1723_v17 = vpack.c.bf16 %v904_v13, %v903_v1  ;;  %v2775_v21 = vpack.c.bf16 %v2441_v23, %v2439_v52 }
  0xbc   : > { %1666 = vmatpush3.bf16.msra.mxu0 %v2773_v9  ;;  %1714 = vmatpush3.bf16.msra.mxu1 %v1713_v10  ;;  %v758_v10 = vmul.f32 %v742_v2, %v2586_v24  ;;  %v481_v9 = vmul.f32 %v1397_v26, %v409_v8  ;;  %v490_v38 = vmul.f32 %v1397_v26, %v470_v63  ;;  %v888_v2 = vld [vmem:[#allocation7 + $0x378] sm:$0xff]  ;;  %v849_v26 = vld [vmem:[#allocation7 + $0x240] sm:$0xff]  ;;  %vm300_vm14 = vcmp.ge.f32.partialorder %v2571_v14, 0.0 }
  0xbd   : > { %1668 = vmatprep.subr.bf16.mxu0 %v2774_v15  ;;  %1716 = vmatprep.subr.bf16.mxu1 %v1715_v60  ;;  %v536_v60 = vrot.slane %v2316_v59, %v2306_v58  ;;  %v491_v43 = vmul.f32 %v2609_v27, %v471_v29  ;;  %v540_v42 = vrot.slane %v2316_v59, %v2466_v61  ;;  %v867_v15 = vld [vmem:[#allocation7 + $0x2d0] sm:$0xff] }
  0xbe   : > { %v766_v37 = vadd.f32 %v758_v10, %v750_v28  ;;  %v592_v34 = vrot.slane %v2330_v6, %v2306_v58  ;;  %v2776_v41 = vpack.c.bf16 %v2447_v31, %v2445_v30  ;;  %v500_v12 = vadd.f32 %v490_v38, %v480_v0  ;;  %v852_v10 = vld [vmem:[#allocation7 + $0x258] sm:$0xff] }
  0xbf   : > { %v560_v52 = vmul.f32 %v536_v60, %v2377_v54  ;;  %v596_v23 = vrot.slane %v2330_v6, %v2466_v61  ;;  %v2630_v4 = vadd.f32 %v491_v43, %v481_v9  ;;  %v561_v8 = vmul.f32 %v540_v42, %v2503_v49  ;;  %v870_v43 = vld [vmem:[#allocation7 + $0x2e8] sm:$0xff] }
  0xc0   : > { %1670 = vmatpush3.bf16.msra.mxu0 %v2775_v21  ;;  %1718 = vmatpush3.bf16.msra.mxu1 %v1717_v56  ;;  %v616_v59 = vmul.f32 %v592_v34, %v2568_v19  ;;  %v676_v55 = vrot.slane %v2339_v11, %v2306_v58  ;;  %v1725_v56 = vpack.c.bf16 %v888_v2, %v887_v22 }
  0xc1   : > { %1672 = vmatprep.subr.bf16.mxu0 %v2776_v41  ;;  %1720 = vmatprep.subr.bf16.mxu1 %v1719_v20  ;;  %v617_v30 = vmul.f32 %v596_v23, %v2571_v14  ;;  %v625_v31 = vmul.f32 %v560_v52, %v2556_v62  ;;  %v725_v38 = vrot.slane %v2344_v16, %v2306_v58  ;;  %v851_v20 = vld [vmem:[#allocation7 + $0x250] sm:$0xff]  ;;  %v853_v52 = vld [vmem:[#allocation7 + $0x260] sm:$0xff]  ;;  %v854_v23 = vld [vmem:[#allocation7 + $0x268] sm:$0xff] }
  0xc2   : > { %1125 = vmatprep.mubr.f32.mxu0 %v766_v37  ;;  %v2777_v6 = vpack.c.bf16 %v2451_v35, %v2449_v32  ;;  %v626_v37 = vmul.f32 %v561_v8, %v500_v12  ;;  %v634_v1 = vmul.f32 %v616_v59, %v500_v12  ;;  %v695_v13 = vmul.f32 %v676_v55, %v2377_v54  ;;  %v868_v35 = vld [vmem:[#allocation7 + $0x2d8] sm:$0xff] }
  0xc3   : > { %v2778_v28 = vpack.c.bf16 %v2459_v51, %v2457_v48  ;;  %v635_v62 = vmul.f32 %v617_v30, %v2630_v4  ;;  %v744_v58 = vmul.f32 %v725_v38, %v2571_v14  ;;  %v672_v32 = vrot.slane %v2339_v11, %v2260_v39 }
  0xc4   : > { %1674 = vmatpush3.bf16.msra.mxu0 %v2777_v6  ;;  %1722 = vmatpush3.bf16.msra.mxu1 %v1721_v44  ;;  %v643_v63 = vadd.f32 %v634_v1, %v625_v31  ;;  %v721_v54 = vrot.slane %v2344_v16, %v2260_v39  ;;  %v664_v48 = vrot.slane %v2339_v11, %v2234_v25  ;;  %v855_v6 = vld [vmem:[#allocation7 + $0x270] sm:$0xff] }
  0xc5   : > { %1676 = vmatprep.subr.bf16.mxu0 %v2778_v28  ;;  %1724 = vmatprep.subr.bf16.mxu1 %v1723_v17  ;;  %v390_v51 = vrot.slane %v2543_v47, %v2222_v18  ;;  %v2657_v44 = vadd.f32 %v635_v62, %v626_v37  ;;  %v694_v29 = vmul.f32 %v672_v32, %v2374_v50  ;;  %v869_v50 = vld [vmem:[#allocation7 + $0x2e0] sm:$0xff]  ;;  %v856_v37 = vld [vmem:[#allocation7 + $0x278] sm:$0xff]  ;;  %v906_v62 = vld [vmem:[#allocation7 + $0x408] sm:$0xff] }
  0xc6   : > { %v2779_v0 = vpack.c.bf16 %v2463_v57, %v2461_v36  ;;  %v1681_v9 = vpack.c.bf16 %v850_v45, %v849_v26  ;;  %v752_v17 = vmul.f32 %v695_v13, %v643_v63  ;;  %v743_v60 = vmul.f32 %v721_v54, %v2568_v19  ;;  %v2782_v28 = vld [vmem:[#allocation14_spill] sm:$0xff] }
  0xc7   : > { %v2780_v39 = vpack.c.bf16 %v2565_v40, %v2563_v53  ;;  %v1683_v21 = vpack.c.bf16 %v868_v35, %v867_v15  ;;  %v1685_v22 = vpack.c.bf16 %v852_v10, %v851_v20  ;;  %v760_v47 = vmul.f32 %v744_v58, %v2657_v44 }
  0xc8   : > { %1678 = vmatpush3.bf16.msra.mxu0 %v2779_v0  ;;  %1726 = vmatpush3.bf16.msra.mxu1 %v1725_v56  ;;  %v751_v2 = vmul.f32 %v694_v29, %v2586_v24  ;;  %v452_v36 = vrot.slane %v2576_v33, %v2222_v18  ;;  %v759_v57 = vmul.f32 %v743_v60, %v643_v63  ;;  %v1400_v33 = vld [vmem:[#allocation2 + $0x28] ss:$0 sm:$0xff]  ;;  %v1995_v54 = vmov 0.0|0.0  }
  0xc9   : > { %1680 = vmatprep.subr.bf16.mxu0 %v2780_v39  ;;  %v265_v42 = vrot.slane %v2477_v7, %v2234_v25  ;;  %v680_v34 = vrot.slane %v2339_v11, %v2466_v61  ;;  %v713_v53 = vrot.slane %v2344_v16, %v2234_v25  ;;  %v410_v40 = vmul.f32 %v390_v51, %v2568_v19  ;;  %v871_v25 = vld [vmem:[#allocation7 + $0x2f0] sm:$0xff]  ;;  %v872_v19 = vld [vmem:[#allocation7 + $0x2f8] sm:$0xff] }
  0xca   : > { %v768_v41 = vadd.f32 %v760_v47, %v752_v17  ;;  %v729_v24 = vrot.slane %v2344_v16, %v2466_v61  ;;  %v767_v12 = vadd.f32 %v759_v57, %v751_v2  ;;  %v1687_v11 = vpack.c.bf16 %v870_v43, %v869_v50  ;;  %v1401_v16 = vld [vmem:[#allocation2 + $0x31] ss:$0 sm:$0xff]  ;;  %v2781_v61 = vld [vmem:[#allocation13_spill] sm:$0xff]  ;;  %v910_v17 = vld [vmem:[#allocation7 + $0x428] sm:$0xff] }
  0xcb   : > { %v289_v18 = vsub.f32 %v2276_v46, %v265_v42  ;;  %v696_v7 = vmul.f32 %v680_v34, %v2503_v49  ;;  %v692_v59 = vmul.f32 %v664_v48, %v2781_v61  ;;  %v741_v46 = vmul.f32 %v713_v53, %v2503_v49  ;;  %v2783_v49 = vld [vmem:[#allocation15_spill] sm:$0xff]  ;;  %v907_v48 = vld [vmem:[#allocation7 + $0x410] sm:$0xff]  ;;  %v908_v51 = vld [vmem:[#allocation7 + $0x418] sm:$0xff] }
  0xcc   : > { %1682 = vmatpush3.bf16.msra.mxu0 %v1681_v9  ;;  %1195 = vmatprep.mubr.f32.mxu1 %v768_v41  ;;  %v482_v55 = vmul.f32 %v2609_v27, %v410_v40  ;;  %v562_v56 = vmul.f32 %v1400_v33, %v2506_v3  ;;  %v1689_v30 = vpack.c.bf16 %v854_v23, %v853_v52  ;;  %v905_v3 = vld [vmem:[#allocation7 + $0x400] sm:$0xff]  ;;  %v912_v39 = vld [vmem:[#allocation7 + $0x438] sm:$0xff]  ;;  %v914_v47 = vld [vmem:[#allocation7 + $0x448] sm:$0xff] }
  0xcd   : > { %1684 = vmatprep.subr.bf16.mxu0 %v1683_v21  ;;  %1196 = vmatmul.mubr.f32.vlgmr.msra.gmra.mrb[2].mxu1 %v767_v12  ;;  %vm311_vm15 = vcmp.lt.f32.partialorder %v289_v18, 0.0  ;;  %v472_v8 = vmul.f32 %v452_v36, %v289_v18  ;;  %v1691_v38 = vpack.c.bf16 %v872_v19, %v871_v25  ;;  %v618_v13 = vmul.f32 %v1401_v16, %v289_v18  ;;  %v909_v9 = vld [vmem:[#allocation7 + $0x420] sm:$0xff]  ;;  %v915_v50 = vld [vmem:[#allocation7 + $0x450] sm:$0xff]  ;;  %v916_v43 = vld [vmem:[#allocation7 + $0x458] sm:$0xff] }
  0xce   : > { %vm322_vm0 = vmand %vm300_vm14, %vm311_vm15  ;;  %v749_v26 = vmul.f32 %v692_v59, %v2782_v28  ;;  %v757_v45 = vmul.f32 %v741_v46, %v2783_v49  ;;  %v627_v14 = vmul.f32 %v562_v56, %v2630_v4  ;;  %v1693_v15 = vpack.c.bf16 %v856_v37, %v855_v6  ;;  %v917_v36 = vld [vmem:[#allocation7 + $0x460] sm:$0xff]  ;;  %v918_v57 = vld [vmem:[#allocation7 + $0x468] sm:$0xff] }
  0xcf   : > { %v1399_v31 = vsel %vm322_vm0, 1.0, %v2771_v5  ;;  %v745_v32 = vmul.f32 %v729_v24, %v289_v18  ;;  %v753_v10 = vmul.f32 %v696_v7, %v2657_v44  ;;  %v1728_v63 = vpack.c.bf16 %v906_v62, %v905_v3  ;;  %v911_v44 = vld [vmem:[#allocation7 + $0x430] sm:$0xff]  ;;  %v920_v53 = vld [vmem:[#allocation7 + $0x478] sm:$0xff] }
  0xd0   : > { %1686 = vmatpush3.bf16.msra.mxu0 %v1685_v22  ;;  %v492_v1 = vmul.f32 %v1399_v31, %v472_v8  ;;  %v765_v35 = vadd.f32 %v757_v45, %v749_v26  ;;  %v1731_v0 = vpack.c.bf16 %v908_v51, %v907_v48  ;;  %v1734_v60 = vpack.c.bf16 %v910_v17, %v909_v9  ;;  %v913_v22 = vld [vmem:[#allocation7 + $0x440] sm:$0xff]  ;;  %v919_v34 = vld [vmem:[#allocation7 + $0x470] sm:$0xff] }
  0xd1   : > { %1688 = vmatprep.subr.bf16.mxu0 %v1687_v11  ;;  %v1737_v21 = vpack.c.bf16 %v912_v39, %v911_v44  ;;  %v1740_v2 = vpack.c.bf16 %v914_v47, %v913_v22  ;;  %v1746_v42 = vpack.c.bf16 %v918_v57, %v917_v36  ;;  %v1749_v40 = vpack.c.bf16 %v920_v53, %v919_v34 }
  0xd2   : > { %v502_v27 = vadd.f32 %v492_v1, %v482_v55 }
  0xd4   : > { %1690 = vmatpush3.bf16.msra.mxu0 %v1689_v30  ;;  %v636_v58 = vmul.f32 %v618_v13, %v502_v27 }
  0xd5   : > { %1692 = vmatprep.subr.bf16.mxu0 %v1691_v38 }
  0xd6   : > { %v645_v20 = vadd.f32 %v636_v58, %v627_v14 }
  0xd8   : > { %1694 = vmatpush3.bf16.msra.mxu0 %v1693_v15  ;;  %v761_v29 = vmul.f32 %v745_v32, %v645_v20 }
  0xd9   : > { %1727 = vmatprep.subr.bf16.mxu0 %v1995_v54 }
  0xda   : > { %v769_v4 = vadd.f32 %v761_v29, %v753_v10 }
  0xdb   : > { %1126 = vmatmul.mubr.f32.vlgmr.msra.gmra.mrb[2].mxu0 %v765_v35 }
  0xdc   : > { %1729 = vmatpush3.bf16.msra.mxu0 %v1728_v63  ;;  %1596 = vmatprep.mubr.msk.f32.mxu0 %vm1996_vm1, %v2771_v5  ;;  %v1743_v5 = vpack.c.bf16 %v916_v43, %v915_v50 }
  0xdd   : > { %1730 = vmatprep.subr.bf16.mxu0 %v1995_v54 }
  0xe0   : > { %1732 = vmatpush3.bf16.msra.mxu0 %v1731_v0 }
  0xe1   : > { %1733 = vmatprep.subr.bf16.mxu0 %v1995_v54 }
  0xe4   : > { %1735 = vmatpush3.bf16.msra.mxu0 %v1734_v60 }
  0xe5   : > { %1736 = vmatprep.subr.bf16.mxu0 %v1995_v54 }
  0xe8   : > { %1738 = vmatpush3.bf16.msra.mxu0 %v1737_v21 }
  0xe9   : > { %1739 = vmatprep.subr.bf16.mxu0 %v1995_v54 }
  0xec   : > { %1741 = vmatpush3.bf16.msra.mxu0 %v1740_v2 }
  0xed   : > { %1742 = vmatprep.subr.bf16.mxu0 %v1995_v54 }
  0xf0   : > { %1744 = vmatpush3.bf16.msra.mxu0 %v1743_v5 }
  0xf1   : > { %1745 = vmatprep.subr.bf16.mxu0 %v1995_v54 }
  0xf4   : > { %1747 = vmatpush3.bf16.msra.mxu0 %v1746_v42 }
  0xf5   : > { %1748 = vmatprep.subr.bf16.mxu0 %v1995_v54 }
  0xf8   : > { %1750 = vmatpush3.bf16.msra.mxu0 %v1749_v40 }
  0xfb   : > { %1597 = vmatmul.mubr.f32.vlgmr.msra.gmra.mrb[4].mxu0 %v769_v4 }
 0x17e   : > { %v1474_v41 = vpop.f32.mrb[0].mxu1 }
 0x17f   : > { %v1475_v24 = vpop.f32.mrb[1].mxu1 }
 0x180   : > { %v1476_v12 = vadd.f32 %v1475_v24, %v1474_v41 }
 0x18e   : > { %v1439_v18 = vpop.f32.mrb[0].mxu0 }
 0x18f   : > { %v1440_v33 = vpop.f32.mrb[1].mxu0 }
 0x190   : > { %v1441_v7 = vadd.f32 %v1440_v33, %v1439_v18 }
 0x192   : > { %v1058_v11 = vadd.f32 %v1476_v12, %v1441_v7 }
 0x1a0   : > { %v1544_v52 = vpop.f32.mrb[2].mxu1 }
 0x1a1   : > { %v1545_v23 = vpop.f32.mrb[3].mxu1 }
 0x1a2   : > { %v1546_v25 = vadd.f32 %v1545_v23, %v1544_v52 }
 0x1ae   : > { %v1509_v19 = vpop.f32.mrb[2].mxu0 }
 0x1af   : > { %v1510_v8 = vpop.f32.mrb[3].mxu0 }
 0x1b0   : > { %v1511_v16 = vadd.f32 %v1510_v8, %v1509_v19 }
 0x1b2   : > { %v1128_v61 = vadd.f32 %v1511_v16, %v1058_v11 }
 0x1b4   : > { %v1198_v59 = vadd.f32 %v1546_v25, %v1128_v61 }
 0x1ce   : > { %v1267_v46 = vpop.f32.mrb[4].mxu0 }
 0x1cf   : > { %v1268_v55 = vadd.f32 %v1267_v46, %v1198_v59  ;;  %v1598_v56 = vpop.f32.mrb[5].mxu0 }
 0x1d1   : > { %1271 = vst [vmem:[%s212_s20] sm:$0xff] %v1268_v55 }
 0x1d2   : > { %1926 = shalt.err (!%p1923_p6)
}
 0x1d3   : > { %s1927_s25 = scalar_lea.hbm %s2700_s30, 128  ;;  %s1931_s17 = scalar_lea.hbm %s2748_s3, 256 }
 0x1d4   : > { %p1928_p10 = scmp.ne.s32.totalorder %s2700_s30, %s1927_s25  ;;  %p1932_p4 = scmp.lt.u32.totalorder %s2700_s30, %s2748_s3 }
 0x1d5   : > { %p1933_p8 = scmp.lt.u32.totalorder %s1931_s17, %s1927_s25  ;;  %p1935_p11 = scmp.lt.u32.totalorder %s1927_s25, %s2700_s30 }
 0x1d6   : > { %p1929_p0 = pnand %p1928_p10, %p2784_p3 }
 0x1d7   : > { %p1934_p5 = por %p1933_p8, %p1932_p4 }
 0x1d8   : > { %p1930_p1 = pneg %p1929_p0 }
 0x1d9   : > { %p1936_p7 = por %p1935_p11, %p1934_p5 }
 0x1db   : > { %p1937_p9 = pnand %p1936_p7, %p1930_p1 }
 0x1dd   : > { %1940 = shalt.err (!%p1937_p9)
}
 0x1de   : > { %1761 = dma.vmem_to_hbm [thread:$0]  (%p2784_p3), %s2702_s28, 128, %s2700_s30, %s1273_s23  }
 0x1df PF: > { %s1298_s21 = sand.u32 1, %s1975_s12   ;;  %p2785_p12 = scmp.ne.s32.totalorder %s2758_s19, 0 }
 0x1e0   : > { %p2786_p2 = scmp.ge.s32.totalorder %s1987_s15, 2  ;;  %s1299_s26 = scalar_lea.sflag [#allocation4], %s1298_s21 }
 0x1e2   : > { %p1775_p13 = pnand %p2786_p2, %p2785_p12 }
 0x1e4   : > { %1970 = dma.done.wait (!%p1775_p13), %s1299_s26, 128  }
 0x1e5   : > { %1972 = vsyncadd (!%p1775_p13), %s1299_s26, 4294967168  ;;  %p17_p6 = scmp.ge.s32.totalorder %s2128_s4, 4   ;;  %s2787_s12 = smov %s1979_s13 }
 0x1e6   : > { %s2788_s13 = smov %s1983_s14  ;;  %s2789_s14 = smov %s2144_s7 }
 0x1e7   : > { %s2790_s15 = smov %s2128_s4  ;;  %19 = sbr.rel (!%p17_p6) target bundleno = 6 (0x6), region = 86 }
 0x1ee   :  { %1304 = vsyncpa [#allocation3], 1 }
 0x1ef   :  { %1306 = vsyncpa [#allocation3 + $0x1], 1 }
 0x1f0   :  { %1307 = vsyncpa [#allocation6], 1 }
 0x1f1   :  { %1309 = vsyncpa [#allocation6 + $0x1], 1 }
 0x1f2   :  { %1310 = vsyncpa [#allocation4], 1 }
 0x1f3   :  { %1312 = vsyncpa [#allocation4 + $0x1], 1 }

</bundles_post_ra>
